<compile_context>
chip_gen: v5e
topology: v5e:2x2
jax: 0.10.0
libtpu: 0.0.40
codegen_flags: <defaults>
</compile_context>

<pallas_src>
import jax
import jax.numpy as jnp
from jax.experimental import pallas as pl
from jax.experimental.pallas import tpu as pltpu


def _make_kernel(b_tile):
    def kernel(w_ref, x_ref, o_ref):
        # w_ref: (t_out, T) f32   — constant band matrix, VMEM-resident
        # x_ref: (b_tile, T, c_tile)   — native layout, channels on lanes
        # o_ref: (b_tile, t_out, c_tile)
        w = w_ref[...]
        for b in range(b_tile):  # small static loop; one MXU matmul per batch row
            o_ref[b] = jnp.dot(
                w,
                x_ref[b].astype(jnp.float32),
                preferred_element_type=jnp.float32,
                precision=jax.lax.Precision.HIGHEST,
            ).astype(o_ref.dtype)

    return kernel


def _band_matrix(T, t_out, kernel_size, stride, pad):
    """W[o, t] = (1/K) * #{k in [0,K) : clip(o*stride + k - pad, 0, T-1) == t}."""
    o = jnp.arange(t_out, dtype=jnp.int32)[:, None]          # (t_out, 1)
    k = jnp.arange(kernel_size, dtype=jnp.int32)[None, :]    # (1, K)
    src = jnp.clip(o * stride + k - pad, 0, T - 1)           # (t_out, K)
    w = jnp.zeros((t_out, T), jnp.float32)
    return w.at[jnp.broadcast_to(o, src.shape), src].add(1.0 / kernel_size)


def _pick_tiles(B, T, C, itemsize):
    """(b_tile, c_tile): ~2 MiB input blocks, lane-dense C tiles, >=2 grid steps."""
    budget = 2 << 20  # per input block (Pallas double-buffers every block)

    # Channel tiling only when C is large and tiles stay multiples of 128 lanes.
    c_tile = C
    if C > 512 and C % 128 == 0 and itemsize * T * C > budget:
        c_tile = max(128, (budget // max(itemsize * T, 1)) // 128 * 128)
        c_tile = min(c_tile, C)
    # TODO(synk): for B == 1 with untileable C and extremely long T, a third
    # grid axis over the T (contraction) dim with an f32 accumulator would be
    # needed to bound VMEM; TimeMixer shapes (T <= ~720) never hit this.

    per_b = itemsize * T * c_tile
    b_tile = max(1, min(B, budget // max(per_b, 1)))
    b_tile = min(b_tile, 16)  # bound the unrolled in-kernel batch loop

    # v7x: guarantee >= 2 grid steps so both TensorCores get work.
    if B >= 2 and b_tile >= B and c_tile >= C:
        b_tile = (B + 1) // 2
    return b_tile, c_tile


def moving_avg(x, kernel_size, stride):
    """x: [B, T, C] -> [B, T_out, C] moving average over time (TimeMixer style)."""
    B, T, C = x.shape
    pad = (kernel_size - 1) // 2
    t_out = (T + 2 * pad - kernel_size) // stride + 1
    assert t_out >= 1, "kernel_size/stride too large for this sequence length"

    w = _band_matrix(T, t_out, kernel_size, stride, pad)      # (t_out, T) f32

    itemsize = jnp.dtype(x.dtype).itemsize
    b_tile, c_tile = _pick_tiles(B, T, C, itemsize)
    grid = (pl.cdiv(B, b_tile), pl.cdiv(C, c_tile))

    vmem_needed = (2 * 4 * t_out * T                                   # W (dbl-buf)
                   + 2 * itemsize * b_tile * c_tile * (T + t_out)      # x/out blocks
                   + (4 << 20))                                        # headroom
    vmem_limit = int(min(max(vmem_needed, 16 << 20), 48 << 20))

    return pl.pallas_call(
        _make_kernel(b_tile),
        out_shape=jax.ShapeDtypeStruct((B, t_out, C), x.dtype),
        grid_spec=pltpu.PrefetchScalarGridSpec(
            num_scalar_prefetch=0,
            grid=grid,
            in_specs=[
                pl.BlockSpec((t_out, T), lambda b, c: (0, 0)),            # W resident
                pl.BlockSpec((b_tile, T, c_tile), lambda b, c: (b, 0, c)),
            ],
            out_specs=pl.BlockSpec((b_tile, t_out, c_tile), lambda b, c: (b, 0, c)),
        ),
        compiler_params=pltpu.CompilerParams(
            dimension_semantics=("parallel", "parallel"),
            vmem_limit_bytes=vmem_limit,
        ),
    )(w, x)


def moving_avg_ref(x, kernel_size, stride):
    """Pure-JAX reference matching the PyTorch module."""
    pad = (kernel_size - 1) // 2
    front = jnp.repeat(x[:, 0:1, :], pad, axis=1)
    end = jnp.repeat(x[:, -1:, :], pad, axis=1)
    xp = jnp.concatenate([front, x, end], axis=1)
    t_out = (xp.shape[1] - kernel_size) // stride + 1
    outs = [jnp.mean(xp[:, t * stride:t * stride + kernel_size, :], axis=1)
            for t in range(t_out)]
    return jnp.stack(outs, axis=1)


if __name__ == "__main__":
    key = jax.random.PRNGKey(0)
    B, T, C = 2, 16, 8
    x = jax.random.normal(key, (B, T, C), dtype=jnp.float32)

    # Typical TimeMixer decomposition config + a strided downsampling config.
    for kernel_size, stride in [(5, 1), (4, 2)]:
        out = jax.block_until_ready(moving_avg(x, kernel_size, stride))
        ref = moving_avg_ref(x, kernel_size, stride)
        assert out.shape == ref.shape, (out.shape, ref.shape)
        assert jnp.allclose(out, ref, atol=1e-5, rtol=1e-5), (
            f"mismatch vs reference for kernel_size={kernel_size}, stride={stride}")

    print("KERNEL_OK")
</pallas_src>

<mosaic_0001>
module attributes {stable_mosaic.version = 11 : i64} {
  func.func @kernel(%arg0: i32, %arg1: i32, %arg2: memref<16x16xf32, #tpu.memory_space<vmem>>, %arg3: memref<1x16x8xf32, #tpu.memory_space<vmem>>, %arg4: memref<1x16x8xf32, #tpu.memory_space<vmem>>) attributes {dimension_semantics = [#tpu.dimension_semantics<parallel>, #tpu.dimension_semantics<parallel>], iteration_bounds = array<i64: 2, 1>, scalar_prefetch = 0 : i64, scratch_operands = 0 : i64, tpu.core_type = #tpu.core_type<tc>, window_params = [{pipeline_mode = #tpu.pipeline_mode<synchronous>, transform_indices = @transform_0, window_bounds = array<i64: 16, 16>}, {transform_indices = @transform_1, window_bounds = array<i64: 1, 16, 8>}, {transform_indices = @transform_2, window_bounds = array<i64: 1, 16, 8>}]} {
    %c0 = arith.constant 0 : index
    %c0_0 = arith.constant 0 : index
    %0 = vector.load %arg2[%c0, %c0_0] : memref<16x16xf32, #tpu.memory_space<vmem>>, vector<16x16xf32>
    %c0_1 = arith.constant 0 : index
    %c0_2 = arith.constant 0 : index
    %c0_3 = arith.constant 0 : index
    %1 = vector.load %arg3[%c0_1, %c0_2, %c0_3] : memref<1x16x8xf32, #tpu.memory_space<vmem>>, vector<1x16x8xf32>
    %2 = vector.shape_cast %1 : vector<1x16x8xf32> to vector<16x8xf32>
    %cst = arith.constant dense<0.000000e+00> : vector<16x8xf32>
    %3 = tpu.matmul %0, %2, %cst {dimension_numbers = #tpu.dot_dimension_numbers<[1], [0], [0], [1], [0, 0, 1, 1], [], []>, precision = #tpu.contract_precision<fp32>} : vector<16x16xf32>, vector<16x8xf32>, vector<16x8xf32> -> vector<16x8xf32>
    %c0_4 = arith.constant 0 : index
    %c0_5 = arith.constant 0 : index
    %c0_6 = arith.constant 0 : index
    %4 = vector.load %arg4[%c0_4, %c0_5, %c0_6] : memref<1x16x8xf32, #tpu.memory_space<vmem>>, vector<1x16x8xf32>
    %5 = vector.shape_cast %4 : vector<1x16x8xf32> to vector<16x8xf32>
    %6 = vector.shape_cast %3 : vector<16x8xf32> to vector<1x16x8xf32>
    tpu.vector_store %arg4[%c0_4, %c0_5, %c0_6], %6 {strides = array<i32>} : memref<1x16x8xf32, #tpu.memory_space<vmem>>, vector<1x16x8xf32>,
    return
  }
  func.func @transform_0(%arg0: i32, %arg1: i32) -> (i32, i32) {
    %c0_i32 = arith.constant 0 : i32
    %c0_i32_0 = arith.constant 0 : i32
    %c0_i32_1 = arith.constant 0 : i32
    return %c0_i32, %c0_i32_0 : i32, i32
  }
  func.func @transform_1(%arg0: i32, %arg1: i32) -> (i32, i32, i32) {
    %c0_i32 = arith.constant 0 : i32
    %c0_i32_0 = arith.constant 0 : i32
    return %arg0, %c0_i32, %arg1 : i32, i32, i32
  }
  func.func @transform_2(%arg0: i32, %arg1: i32) -> (i32, i32, i32) {
    %c0_i32 = arith.constant 0 : i32
    %c0_i32_0 = arith.constant 0 : i32
    return %arg0, %c0_i32, %arg1 : i32, i32, i32
  }
}

</mosaic_0001>

<bundles_post_ra>
// kernel: tpu_custom_call.1
= control target key start
LH: loop header
LB: loop body
LE: loop exit
PB: predicated region body
PF: predicated region fallthrough
CT: control target
= control target key end

     0   :  { %s542_s9 = smov 0   ;;  %s544_s10 = smov 0   ;;  %s588_s0 = inlined_call_operand.vmem [shape: f32[16,16], index: 0, kind: input, shape index: {}]   ;;  %s589_s1 = inlined_call_operand.vmem [shape: f32[2,16,8], index: 1, kind: input, shape index: {}]   ;;  %s590_s2 = inlined_call_operand.vmem [shape: f32[2,16,8], index: 2, kind: output, shape index: {}]  }
   0x1   :  { %s546_s11 = smov 0  }
   0x2 LB: > { %s24_s12 = sadd.s32 1, %s521_s10  ;;  %p466_p0 = scmp.ge.s32.totalorder %s525_s11, 1  ;;  %s525_s11 = sphi %s546_s11, %s12_s11   ;;  %s521_s10 = sphi %s544_s10, %s592_s10   ;;  %s517_s9 = sphi %s542_s9, %s591_s9  }
   0x3   : > { %p26_p1 = scmp.ge.s32.totalorder %s24_s12, 2  ;;  %p131_p2 = scmp.lt.s32.totalorder %s525_s11, 3 }
   0x5   : > { %s594_s12 = smov (%p26_p1, %s24_s12), 0  ;;  %p132_p3 = pnand %p466_p0, %p131_p2 }
   0x6   : > { %p159_p4 = scmp.lt.s32.totalorder (!%p132_p3), %s517_s9, 1 }
   0x7   : > { %135 = sbr.rel (%p132_p3) target bundleno = 184 (0xb8), region = 28 }
   0xc   : > { %v176_v0 = vld [vmem:[%s588_s0 + $0x8] sm:$0xff]  ;;  %vm179_vm0 = vcmask 130048   ;;  %v175_v1 = vld [vmem:[%s588_s0] sm:$0xff]  ;;  %s596_s9 = smov (!%p159_p4, %s517_s9), 1  ;;  %vm376_vm1 = vcmask 64512  }
   0xd   : > { %v184_v2 = vsel %vm179_vm0, %v176_v0, 0  ;;  %v181_v3 = vsel %vm179_vm0, %v175_v1, 0  ;;  %s473_s17 = sshll.u32 %s596_s9, 4 }
   0xe   : > { %v212_v4 = vand.u32 4294901760, %v184_v2  ;;  %v204_v5 = vand.u32 4294901760, %v181_v3  ;;  %s166_s20 = scalar_lea.vmem %s589_s1, %s473_s17  ;;  %s174_s23 = scalar_lea.vmem %s590_s2, %s473_s17 }
   0xf   : > { %v178_v8 = vld [vmem:[%s166_s20 + $0x8] sm:$0xff]  ;;  %v177_v9 = vld [vmem:[%s166_s20] sm:$0xff] }
  0x10   : > { %v213_v6 = vsub.f32 %v184_v2, %v212_v4  ;;  %v205_v7 = vsub.f32 %v181_v3, %v204_v5  ;;  %v200_v12 = vand.u32 4294901760, %v178_v8  ;;  %v202_v13 = vand.u32 4294901760, %v177_v9 }
  0x12   : > { %v214_v10 = vand.u32 4294901760, %v213_v6  ;;  %v206_v11 = vand.u32 4294901760, %v205_v7  ;;  %475 = vmatpush.msra.mxu2 %v200_v12  ;;  %v236_v16 = vsub.f32 %v178_v8, %v200_v12  ;;  %v242_v17 = vsub.f32 %v177_v9, %v202_v13  ;;  %201 = vmatpush.msra.mxu0 %v200_v12 }
  0x14   : > { %v215_v14 = vsub.f32 %v213_v6, %v214_v10  ;;  %v207_v15 = vsub.f32 %v205_v7, %v206_v11  ;;  %476 = vmatpush.msra.mxu2 %v202_v13  ;;  %v237_v20 = vand.u32 4294901760, %v236_v16  ;;  %v243_v21 = vand.u32 4294901760, %v242_v17  ;;  %203 = vmatpush.msra.mxu0 %v202_v13 }
  0x16   : > { %v216_v18 = vand.u32 4294901760, %v215_v14  ;;  %v208_v19 = vand.u32 4294901760, %v207_v15  ;;  %v238_v22 = vsub.f32 %v236_v16, %v237_v20  ;;  %272 = vmatpush.msrb.mxu2 %v236_v16  ;;  %v244_v23 = vsub.f32 %v242_v17, %v243_v21  ;;  %335 = vmatpush.msrb.mxu0 %v237_v20 }
  0x18   : > { %217 = vmatmul.f32.vlgmr.msra.gmra.mxu2 %v216_v18  ;;  %209 = vmatmul.f32.vlgmr.msra.gmra.mxu0 %v208_v19  ;;  %v239_v24 = vand.u32 4294901760, %v238_v22  ;;  %v245_v25 = vand.u32 4294901760, %v244_v23 }
  0x19   : > { %275 = vmatpush.msrb.mxu2 %v242_v17  ;;  %339 = vmatpush.msrb.mxu0 %v243_v21 }
  0x1a   : > { %477 = vmatpush.msra.mxu3 %v239_v24  ;;  %240 = vmatpush.msra.mxu1 %v239_v24 }
  0x1c   : > { %478 = vmatpush.msra.mxu3 %v245_v25  ;;  %246 = vmatpush.msra.mxu1 %v245_v25 }
  0x1d   : > { %252 = vmatmul.f32.vlgmr.msra.gmra.mxu3 %v212_v4  ;;  %248 = vmatmul.f32.vlgmr.msra.gmra.mxu1 %v204_v5 }
  0x1e   : > { %302 = vmatpush.msrb.mxu3 %v200_v12  ;;  %364 = vmatpush.msrb.mxu1 %v200_v12 }
  0x20   : > { %278 = vmatmul.f32.vlgmr.msrb.gmra.mxu2 %v205_v7  ;;  %341 = vmatmul.f32.vlgmr.msrb.gmra.mxu0 %v204_v5 }
  0x21   : > { %304 = vmatpush.msrb.mxu3 %v202_v13  ;;  %366 = vmatpush.msrb.mxu1 %v202_v13 }
  0x25   : > { %308 = vmatmul.f32.vlgmr.msrb.gmra.mxu3 %v206_v11  ;;  %368 = vmatmul.f32.vlgmr.msrb.gmra.mxu1 %v204_v5 }
  0x28   : > { %283 = vmatmul.f32.gmra.mxu2 %v213_v6  ;;  %345 = vmatmul.f32.gmra.mxu0 %v212_v4 }
  0x2d   : > { %314 = vmatmul.f32.gmra.mxu3 %v214_v10  ;;  %372 = vmatmul.f32.gmra.mxu1 %v212_v4 }
  0x95   : > { %v210_v27 = vpop.f32.mrf.mxu0 }
  0x9a   : > { %v249_v29 = vpop.f32.mrf.mxu1 }
  0x9b   : > { %v218_v26 = vpop.f32.mrf.mxu2  ;;  %v250_v31 = vadd.f32 %v249_v29, %v210_v27 }
  0x9d   : > { %v342_v32 = vpop.f32.mrf.mxu0 }
  0xa0   : > { %v253_v28 = vpop.f32.mrf.mxu3 }
  0xa1   : > { %v254_v39 = vadd.f32 %v253_v28, %v218_v26 }
  0xa2   : > { %v369_v35 = vpop.f32.mrf.mxu1 }
  0xa3   : > { %v279_v30 = vpop.f32.mrf.mxu2 }
  0xa4   : > { %v280_v33 = vadd.f32 %v279_v30, %v250_v31 }
  0xa5   : > { %v346_v43 = vpop.f32.mrf.mxu0 }
  0xa8   : > { %v309_v34 = vpop.f32.mrf.mxu3 }
  0xa9   : > { %v310_v36 = vadd.f32 %v309_v34, %v280_v33 }
  0xaa   : > { %v373_v45 = vpop.f32.mrf.mxu1 }
  0xab   : > { %v343_v37 = vadd.f32 %v342_v32, %v310_v36  ;;  %v284_v38 = vpop.f32.mrf.mxu2 }
  0xac   : > { %v285_v41 = vadd.f32 %v284_v38, %v254_v39 }
  0xad   : > { %v370_v40 = vadd.f32 %v369_v35, %v343_v37 }
  0xaf   : > { %377 = vst.msk [vmem:[%s174_s23] sm:$0xff] %vm376_vm1, %v370_v40 }
  0xb0   : > { %v315_v42 = vpop.f32.mrf.mxu3 }
  0xb1   : > { %v316_v44 = vadd.f32 %v315_v42, %v285_v41 }
  0xb3   : > { %v347_v46 = vadd.f32 %v346_v43, %v316_v44 }
  0xb5   : > { %v374_v47 = vadd.f32 %v373_v45, %v347_v46 }
  0xb7   : > { %378 = vst.msk [vmem:[%s174_s23 + $0x8] sm:$0xff] %vm376_vm1, %v374_v47 }
  0xb8 PF: > { %s12_s11 = sadd.s32 1, %s525_s11   ;;  %s591_s9 = smov %s521_s10 }
  0xb9   : > { %p9_p5 = scmp.ge.s32.totalorder %s12_s11, 4   ;;  %s592_s10 = smov %s594_s12 }
  0xbb   :  { %11 = sbr.rel (!%p9_p5) target bundleno = 2 (0x2), region = 58 }

</bundles_post_ra>
